<compile_context>
chip_gen: v7x
topology: tpu7x:2x2x1
jax: 0.10.0
libtpu: 0.0.40
codegen_flags: <defaults>
</compile_context>

<pallas_src>
import math

import jax
import jax.numpy as jnp
from jax import lax
from jax.experimental import pallas as pl
from jax.experimental.pallas import tpu as pltpu

_LANE_CHUNK = 1024   # samples processed per inner step; keeps vreg pressure low


def mlp_kernel(x_ref, w1_ref, b1_ref, w2_ref, b2_ref, o_ref):
    # x_ref : (2, TB)   -- batch on the lane axis
    # w1_ref: (16, 2), b1_ref: (16, 1), w2_ref: (16, 1), b2_ref: (1, 1)
    # o_ref : (1, TB)   -- lane-dense output
    w1 = w1_ref[...]
    b1 = b1_ref[...]
    w2 = w2_ref[...]
    b2 = b2_ref[...]
    w1_x0 = w1[:, 0:1]            # (16, 1) weights for input feature 0
    w1_x1 = w1[:, 1:2]            # (16, 1) weights for input feature 1

    n_chunks = x_ref.shape[1] // _LANE_CHUNK

    def body(c, carry):
        off = pl.multiple_of(c * _LANE_CHUNK, _LANE_CHUNK)
        x = x_ref[:, pl.ds(off, _LANE_CHUNK)]                # (2, C)
        # Linear(2, 16) as broadcast FMA, then ReLU (pure VPU work, no MXU)
        h = w1_x0 * x[0:1, :] + w1_x1 * x[1:2, :] + b1       # (16, C)
        h = jnp.maximum(h, 0.0)
        # Linear(16, 1): weighted sum over 16 hidden sublanes + bias, then sigmoid (EUP)
        z = jnp.sum(w2 * h, axis=0, keepdims=True) + b2      # (1, C)
        o_ref[:, pl.ds(off, _LANE_CHUNK)] = jax.nn.sigmoid(z).astype(o_ref.dtype)
        return carry

    lax.fori_loop(0, n_chunks, body, 0)


def _round_up(n, m):
    return ((n + m - 1) // m) * m


def linear_classifier(x, w1, b1, w2, b2, *, tile_b=32768):
    """x: (B, 2) f32 -> (B, 1) f32.  w1:(16,2) b1:(16,1) w2:(16,1) b2:(1,1)."""
    B = x.shape[0]
    assert x.shape[1] == 2

    # batch tile: multiple of the inner 1024-lane chunk, capped by (padded) batch
    tb = min(_round_up(tile_b, _LANE_CHUNK), _round_up(B, _LANE_CHUNK))
    Bp = _round_up(B, tb)

    # (features, batch) layout; pad batch (lane axis) up to the tile boundary
    xT = jnp.transpose(x).astype(jnp.float32)                 # (2, B)
    if Bp != B:
        xT = jnp.pad(xT, ((0, 0), (0, Bp - B)))

    grid = (Bp // tb,)
    out = pl.pallas_call(
        mlp_kernel,
        out_shape=jax.ShapeDtypeStruct((1, Bp), jnp.float32),
        grid=grid,
        in_specs=[
            pl.BlockSpec((2, tb), lambda i: (0, i)),          # x tile streamed over batch
            pl.BlockSpec((16, 2), lambda i: (0, 0)),          # weights: constant index_map,
            pl.BlockSpec((16, 1), lambda i: (0, 0)),          #   VMEM-resident across steps
            pl.BlockSpec((16, 1), lambda i: (0, 0)),
            pl.BlockSpec((1, 1), lambda i: (0, 0)),
        ],
        out_specs=pl.BlockSpec((1, tb), lambda i: (0, i)),    # lane-dense output tile
        compiler_params=pltpu.CompilerParams(
            dimension_semantics=("parallel",)),               # dual-TC split on v7x
    )(xT, w1, b1, w2, b2)

    return out[0, :B].reshape(B, 1)


def init_params(key):
    """Deterministic init mimicking torch.nn.Linear default U(-1/sqrt(fan_in), 1/sqrt(fan_in))."""
    k1, k2, k3, k4 = jax.random.split(key, 4)
    bound1 = 1.0 / math.sqrt(2.0)
    bound2 = 1.0 / math.sqrt(16.0)
    w1 = jax.random.uniform(k1, (16, 2), jnp.float32, -bound1, bound1)   # torch (out, in) layout
    b1 = jax.random.uniform(k2, (16, 1), jnp.float32, -bound1, bound1)
    w2 = jax.random.uniform(k3, (16, 1), jnp.float32, -bound2, bound2)   # torch (1,16) transposed
    b2 = jax.random.uniform(k4, (1, 1), jnp.float32, -bound2, bound2)
    return w1, b1, w2, b2


def reference(x, w1, b1, w2, b2):
    h = jnp.maximum(x @ w1.T + b1.T, 0.0)        # (B, 16)
    return jax.nn.sigmoid(h @ w2 + b2)           # (B, 1)


if __name__ == "__main__":
    key = jax.random.PRNGKey(0)
    kp, kx1, kx2 = jax.random.split(key, 3)
    params = init_params(kp)

    # small-batch check (spec-sized input: batch=8, features=2)
    x_small = jax.random.normal(kx1, (8, 2), jnp.float32)
    out_small = jax.block_until_ready(linear_classifier(x_small, *params))
    assert out_small.shape == (8, 1)
    assert jnp.allclose(out_small, reference(x_small, *params), atol=1e-5), "mismatch (small)"

    # ragged batch that exercises multiple grid steps + lane padding
    x_big = jax.random.normal(kx2, (2369, 2), jnp.float32)
    out_big = jax.block_until_ready(linear_classifier(x_big, *params, tile_b=1024))
    assert out_big.shape == (2369, 1)
    assert jnp.allclose(out_big, reference(x_big, *params), atol=1e-5), "mismatch (big)"

    print("KERNEL_OK")
</pallas_src>

<mosaic_0001>
module attributes {stable_mosaic.version = 11 : i64} {
  func.func @mlp_kernel(%arg0: i32, %arg1: memref<2x1024xf32, #tpu.memory_space<vmem>>, %arg2: memref<16x2xf32, #tpu.memory_space<vmem>>, %arg3: memref<16x1xf32, #tpu.memory_space<vmem>>, %arg4: memref<16x1xf32, #tpu.memory_space<vmem>>, %arg5: memref<1x1xf32, #tpu.memory_space<vmem>>, %arg6: memref<1x1024xf32, #tpu.memory_space<vmem>>) attributes {dimension_semantics = [#tpu.dimension_semantics<parallel>], iteration_bounds = array<i64: 1>, scalar_prefetch = 0 : i64, scratch_operands = 0 : i64, tpu.core_type = #tpu.core_type<tc>, window_params = [{transform_indices = @transform_0, window_bounds = array<i64: 2, 1024>}, {pipeline_mode = #tpu.pipeline_mode<synchronous>, transform_indices = @transform_1, window_bounds = array<i64: 16, 2>}, {pipeline_mode = #tpu.pipeline_mode<synchronous>, transform_indices = @transform_2, window_bounds = array<i64: 16, 1>}, {pipeline_mode = #tpu.pipeline_mode<synchronous>, transform_indices = @transform_3, window_bounds = array<i64: 16, 1>}, {pipeline_mode = #tpu.pipeline_mode<synchronous>, transform_indices = @transform_4, window_bounds = array<i64: 1, 1>}, {transform_indices = @transform_5, window_bounds = array<i64: 1, 1024>}]} {
    %c0 = arith.constant 0 : index
    %c0_0 = arith.constant 0 : index
    %0 = vector.load %arg2[%c0, %c0_0] : memref<16x2xf32, #tpu.memory_space<vmem>>, vector<16x2xf32>
    %c0_1 = arith.constant 0 : index
    %c0_2 = arith.constant 0 : index
    %1 = vector.load %arg3[%c0_1, %c0_2] : memref<16x1xf32, #tpu.memory_space<vmem>>, vector<16x1xf32>
    %c0_3 = arith.constant 0 : index
    %c0_4 = arith.constant 0 : index
    %2 = vector.load %arg4[%c0_3, %c0_4] : memref<16x1xf32, #tpu.memory_space<vmem>>, vector<16x1xf32>
    %c0_5 = arith.constant 0 : index
    %c0_6 = arith.constant 0 : index
    %3 = vector.load %arg5[%c0_5, %c0_6] : memref<1x1xf32, #tpu.memory_space<vmem>>, vector<1x1xf32>
    %4 = vector.extract_strided_slice %0 {offsets = [0, 0], sizes = [16, 1], strides = [1, 1]} : vector<16x2xf32> to vector<16x1xf32>
    %5 = vector.extract_strided_slice %0 {offsets = [0, 1], sizes = [16, 1], strides = [1, 1]} : vector<16x2xf32> to vector<16x1xf32>
    %c0_i32 = arith.constant 0 : i32
    %c1024_i32 = arith.constant 1024 : i32
    %6 = arith.muli %c0_i32, %c1024_i32 : i32
    %7 = tpu.assume_multiple %6, 1024 : i32
    %c0_7 = arith.constant 0 : index
    %8 = arith.index_cast %7 : i32 to index
    %9 = vector.load %arg1[%c0_7, %8] : memref<2x1024xf32, #tpu.memory_space<vmem>>, vector<2x1024xf32>
    %10 = vector.extract_strided_slice %9 {offsets = [0, 0], sizes = [1, 1024], strides = [1, 1]} : vector<2x1024xf32> to vector<1x1024xf32>
    %11 = vector.broadcast %4 : vector<16x1xf32> to vector<16x1024xf32>
    %12 = vector.broadcast %10 : vector<1x1024xf32> to vector<16x1024xf32>
    %13 = arith.mulf %11, %12 : vector<16x1024xf32>
    %14 = vector.extract_strided_slice %9 {offsets = [1, 0], sizes = [1, 1024], strides = [1, 1]} : vector<2x1024xf32> to vector<1x1024xf32>
    %15 = vector.broadcast %5 : vector<16x1xf32> to vector<16x1024xf32>
    %16 = vector.broadcast %14 : vector<1x1024xf32> to vector<16x1024xf32>
    %17 = arith.mulf %15, %16 : vector<16x1024xf32>
    %18 = arith.addf %13, %17 : vector<16x1024xf32>
    %19 = vector.broadcast %1 : vector<16x1xf32> to vector<16x1024xf32>
    %20 = arith.addf %18, %19 : vector<16x1024xf32>
    %cst = arith.constant 0.000000e+00 : f32
    %21 = vector.broadcast %cst : f32 to vector<16x1024xf32>
    %22 = arith.maximumf %20, %21 : vector<16x1024xf32>
    %23 = vector.broadcast %2 : vector<16x1xf32> to vector<16x1024xf32>
    %24 = arith.mulf %23, %22 : vector<16x1024xf32>
    %cst_8 = arith.constant dense<0.000000e+00> : vector<1024xf32>
    %25 = vector.multi_reduction <add>, %24, %cst_8 [0] : vector<16x1024xf32> to vector<1024xf32>
    %26 = vector.shape_cast %25 : vector<1024xf32> to vector<1x1024xf32>
    %27 = vector.broadcast %3 : vector<1x1xf32> to vector<1x1024xf32>
    %28 = arith.addf %26, %27 : vector<1x1024xf32>
    %29 = arith.negf %28 : vector<1x1024xf32>
    %30 = math.exp %29 : vector<1x1024xf32>
    %cst_9 = arith.constant 1.000000e+00 : f32
    %31 = vector.broadcast %cst_9 : f32 to vector<1x1024xf32>
    %32 = arith.addf %31, %30 : vector<1x1024xf32>
    %33 = arith.divf %31, %32 : vector<1x1024xf32>
    %c0_10 = arith.constant 0 : index
    %34 = arith.index_cast %7 : i32 to index
    %35 = vector.load %arg6[%c0_10, %34] : memref<1x1024xf32, #tpu.memory_space<vmem>>, vector<1x1024xf32>
    tpu.vector_store %arg6[%c0_10, %34], %33 {strides = array<i32>} : memref<1x1024xf32, #tpu.memory_space<vmem>>, vector<1x1024xf32>,
    %c1_i32 = arith.constant 1 : i32
    return
  }
  func.func @transform_0(%arg0: i32) -> (i32, i32) {
    %c0_i32 = arith.constant 0 : i32
    %c0_i32_0 = arith.constant 0 : i32
    return %c0_i32, %arg0 : i32, i32
  }
  func.func @transform_1(%arg0: i32) -> (i32, i32) {
    %c0_i32 = arith.constant 0 : i32
    %c0_i32_0 = arith.constant 0 : i32
    %c0_i32_1 = arith.constant 0 : i32
    return %c0_i32, %c0_i32_0 : i32, i32
  }
  func.func @transform_2(%arg0: i32) -> (i32, i32) {
    %c0_i32 = arith.constant 0 : i32
    %c0_i32_0 = arith.constant 0 : i32
    %c0_i32_1 = arith.constant 0 : i32
    return %c0_i32, %c0_i32_0 : i32, i32
  }
  func.func @transform_3(%arg0: i32) -> (i32, i32) {
    %c0_i32 = arith.constant 0 : i32
    %c0_i32_0 = arith.constant 0 : i32
    %c0_i32_1 = arith.constant 0 : i32
    return %c0_i32, %c0_i32_0 : i32, i32
  }
  func.func @transform_4(%arg0: i32) -> (i32, i32) {
    %c0_i32 = arith.constant 0 : i32
    %c0_i32_0 = arith.constant 0 : i32
    %c0_i32_1 = arith.constant 0 : i32
    return %c0_i32, %c0_i32_0 : i32, i32
  }
  func.func @transform_5(%arg0: i32) -> (i32, i32) {
    %c0_i32 = arith.constant 0 : i32
    %c0_i32_0 = arith.constant 0 : i32
    return %c0_i32, %arg0 : i32, i32
  }
}

</mosaic_0001>

<bundles_post_ra>
// kernel: tpu_custom_call.1
= control target key start
LH: loop header
LB: loop body
LE: loop exit
PB: predicated region body
PF: predicated region fallthrough
CT: control target
= control target key end

     0   :  { %s674_s0 = inlined_call_operand.vmem [shape: f32[2,1024], index: 0, kind: input, shape index: {}]   ;;  %s675_s1 = inlined_call_operand.vmem [shape: f32[16,2], index: 1, kind: input, shape index: {}]   ;;  %s676_s2 = inlined_call_operand.vmem [shape: f32[16,1], index: 2, kind: input, shape index: {}]   ;;  %s677_s3 = inlined_call_operand.vmem [shape: f32[16,1], index: 3, kind: input, shape index: {}]   ;;  %s678_s4 = inlined_call_operand.<no memory space> [shape: f32[1,1], index: 4, kind: input, shape index: {}]   ;;  %s679_s5 = inlined_call_operand.hbm [shape: f32[1,1024], index: 5, kind: output, shape index: {}]  }
   0x1   :  { %v10_v0 = vstv %s678_s4 }
   0x2   :  { %11 = vst [vmem:[#allocation2] sm:$0x1] %v10_v0 }
   0x3   :  { %v23_v1 = vld [vmem:[%s675_s1] sm:$0xff]  ;;  %v577_v2 = vmov 1   ;;  %v578_v3 = vmov 0   ;;  %v24_v4 = vld [vmem:[%s675_s1 + $0x8] sm:$0xff] }
   0x4   :  { %519 = vset.pattern.permute.xlu1 %v577_v2  ;;  %518 = vset.pattern.permute.xlu0 %v578_v3 }
   0x5   :  { %133 = vperm.xlu1 %519, %v23_v1   ;;  %34 = vperm.xlu0 %518, %v23_v1  }
   0x6   :  { %12 = vsyncpa [#allocation4], 0  ;;  %v25_v5 = vld [vmem:[%s676_s2] sm:$0xff]  ;;  %v26_v6 = vld [vmem:[%s676_s2 + $0x8] sm:$0xff]  ;;  %v44_v10 = vlaneseq }
   0x7   :  { %v27_v7 = vld [vmem:[%s677_s3] sm:$0xff]  ;;  %v28_v8 = vld [vmem:[%s677_s3 + $0x8] sm:$0xff] }
   0x8   :  { %v632_v11 = vshrl.u32 %v44_v10, 7  ;;  %v30_v16 = vld [vmem:[%s674_s0] sm:$0xff]  ;;  %v31_v17 = vld [vmem:[%s674_s0 + $0x8] sm:$0xff]  ;;  %s580_s0 = smov [#allocation3]  }
   0x9   :  { %137 = vperm.xlu1 %519, %v24_v4   ;;  %39 = vperm.xlu0 %518, %v24_v4   ;;  %v29_v9 = vld [vmem:[#allocation2] sm:$0x1]  ;;  %s498_s7 = sshll.u32 %s580_s0, 4  ;;  %s499_s7 = int_to_ptr.vmem [resolvable:$true] %s498_s7 }
   0xa   :  { %v142_v12 = vsub.s32 1, %v632_v11  ;;  %v146_v13 = vsub.s32 3, %v632_v11  ;;  %v150_v14 = vsub.s32 5, %v632_v11  ;;  %v154_v15 = vsub.s32 7, %v632_v11  ;;  %s553_s8 = scalar_lea.vmem %s499_s7, 128  ;;  %p558_p1 = scmp.lt.s32.totalorder %s499_s7, %s499_s7 }
   0xb   :  { %v645_v18 = vsub.s32 0, %v632_v11  ;;  %v50_v19 = vsub.s32 2, %v632_v11  ;;  %v54_v20 = vsub.s32 4, %v632_v11  ;;  %v58_v21 = vsub.s32 6, %v632_v11  ;;  %p554_p0 = scmp.ne.s32.totalorder %s499_s7, %s553_s8  ;;  %p559_p2 = scmp.lt.s32.totalorder %s553_s8, %s553_s8 }
   0xc   :  { %v143_v22 = vrot.slane %v30_v16, %v142_v12  ;;  %v147_v23 = vrot.slane %v30_v16, %v146_v13  ;;  %v151_v24 = vrot.slane %v30_v16, %v150_v14  ;;  %v155_v25 = vrot.slane %v30_v16, %v154_v15 }
   0xd   :  { %520 = vset.pattern.permute.xlu1 %v578_v3  ;;  %246 = vperm.xlu0 %518, %v25_v5   ;;  %v159_v26 = vrot.slane %v31_v17, %v142_v12  ;;  %v163_v27 = vrot.slane %v31_v17, %v146_v13  ;;  %v167_v28 = vrot.slane %v31_v17, %v150_v14  ;;  %p560_p3 = por %p559_p2, %p558_p1 }
   0xe   :  { %251 = vperm.xlu1 %520, %v26_v6   ;;  %v171_v29 = vrot.slane %v31_v17, %v154_v15  ;;  %v47_v30 = vrot.slane %v30_v16, %v645_v18  ;;  %v51_v31 = vrot.slane %v30_v16, %v50_v19  ;;  %v55_v32 = vrot.slane %v30_v16, %v54_v20 }
   0xf   :  { %v59_v33 = vrot.slane %v30_v16, %v58_v21  ;;  %v63_v34 = vrot.slane %v31_v17, %v645_v18  ;;  %v67_v35 = vrot.slane %v31_v17, %v50_v19  ;;  %v71_v36 = vrot.slane %v31_v17, %v54_v20  ;;  %p561_p4 = pnand %p560_p3, %p554_p0 }
  0x10   :  { %v75_v37 = vrot.slane %v31_v17, %v58_v21  ;;  %v183_v38 = vrot.slane %v143_v22, %v142_v12  ;;  %v187_v39 = vrot.slane %v147_v23, %v142_v12  ;;  %v191_v40 = vrot.slane %v151_v24, %v142_v12 }
  0x11   :  { %288 = vperm.xlu0 %518, %v27_v7   ;;  %v195_v41 = vrot.slane %v155_v25, %v142_v12  ;;  %v199_v42 = vrot.slane %v159_v26, %v142_v12  ;;  %v203_v43 = vrot.slane %v163_v27, %v142_v12  ;;  %v207_v44 = vrot.slane %v167_v28, %v142_v12 }
  0x12   :  { %293 = vperm.xlu1 %520, %v28_v8   ;;  %v211_v45 = vrot.slane %v171_v29, %v142_v12  ;;  %v87_v46 = vrot.slane %v47_v30, %v645_v18  ;;  %v91_v47 = vrot.slane %v51_v31, %v645_v18  ;;  %v95_v48 = vrot.slane %v55_v32, %v645_v18 }
  0x13   :  { %v99_v49 = vrot.slane %v59_v33, %v645_v18  ;;  %v103_v51 = vrot.slane %v63_v34, %v645_v18  ;;  %v107_v52 = vrot.slane %v67_v35, %v645_v18  ;;  %v111_v53 = vrot.slane %v71_v36, %v645_v18 }
  0x14   :  { %v115_v54 = vrot.slane %v75_v37, %v645_v18 }
  0x15   :  { %370 = vperm.xlu0 %518, %v29_v9  }
  0x84   :  { %v134_v50 = vpop.permute.xlu1 %133  ;;  %v35_v55 = vpop.permute.xlu0 %34 }
  0x85   :  { %v212_v56 = vmul.f32 %v183_v38, %v134_v50  ;;  %v213_v57 = vmul.f32 %v187_v39, %v134_v50  ;;  %v214_v58 = vmul.f32 %v191_v40, %v134_v50  ;;  %v215_v59 = vmul.f32 %v195_v41, %v134_v50 }
  0x86   :  { %v216_v60 = vmul.f32 %v199_v42, %v134_v50  ;;  %v217_v61 = vmul.f32 %v203_v43, %v134_v50  ;;  %v218_v62 = vmul.f32 %v207_v44, %v134_v50  ;;  %v219_v63 = vmul.f32 %v211_v45, %v134_v50 }
  0x87   :  { %v116_v0 = vmul.f32 %v87_v46, %v35_v55  ;;  %v117_v1 = vmul.f32 %v91_v47, %v35_v55  ;;  %v118_v2 = vmul.f32 %v95_v48, %v35_v55  ;;  %v119_v3 = vmul.f32 %v99_v49, %v35_v55 }
  0x88   :  { %v120_v4 = vmul.f32 %v103_v51, %v35_v55  ;;  %v121_v5 = vmul.f32 %v107_v52, %v35_v55  ;;  %v122_v6 = vmul.f32 %v111_v53, %v35_v55  ;;  %v123_v7 = vmul.f32 %v115_v54, %v35_v55  ;;  %v138_v8 = vpop.permute.xlu1 %137  ;;  %v40_v9 = vpop.permute.xlu0 %39 }
  0x89   :  { %v220_v10 = vmul.f32 %v183_v38, %v138_v8  ;;  %v221_v12 = vmul.f32 %v187_v39, %v138_v8  ;;  %v222_v13 = vmul.f32 %v191_v40, %v138_v8  ;;  %v223_v14 = vmul.f32 %v195_v41, %v138_v8 }
  0x8a   :  { %v224_v15 = vmul.f32 %v199_v42, %v138_v8  ;;  %v225_v16 = vmul.f32 %v203_v43, %v138_v8  ;;  %v226_v17 = vmul.f32 %v207_v44, %v138_v8  ;;  %v227_v19 = vmul.f32 %v211_v45, %v138_v8 }
  0x8b   :  { %v124_v20 = vmul.f32 %v87_v46, %v40_v9  ;;  %v125_v21 = vmul.f32 %v91_v47, %v40_v9  ;;  %v126_v22 = vmul.f32 %v95_v48, %v40_v9  ;;  %v127_v23 = vmul.f32 %v99_v49, %v40_v9 }
  0x8c   :  { %v128_v24 = vmul.f32 %v103_v51, %v40_v9  ;;  %v129_v25 = vmul.f32 %v107_v52, %v40_v9  ;;  %v130_v26 = vmul.f32 %v111_v53, %v40_v9  ;;  %v131_v27 = vmul.f32 %v115_v54, %v40_v9  ;;  %v247_v28 = vpop.permute.xlu0 %246 }
  0x8d   :  { %v228_v29 = vadd.f32 %v212_v56, %v116_v0  ;;  %v229_v30 = vadd.f32 %v213_v57, %v117_v1  ;;  %v230_v31 = vadd.f32 %v214_v58, %v118_v2  ;;  %v231_v32 = vadd.f32 %v215_v59, %v119_v3  ;;  %v252_v53 = vpop.permute.xlu1 %251 }
  0x8e   :  { %v232_v33 = vadd.f32 %v216_v60, %v120_v4  ;;  %v233_v34 = vadd.f32 %v217_v61, %v121_v5  ;;  %v234_v35 = vadd.f32 %v218_v62, %v122_v6  ;;  %v235_v36 = vadd.f32 %v219_v63, %v123_v7 }
  0x8f   :  { %v254_v37 = vadd.f32 %v247_v28, %v228_v29  ;;  %v255_v38 = vadd.f32 %v247_v28, %v229_v30  ;;  %v256_v39 = vadd.f32 %v247_v28, %v230_v31  ;;  %v257_v40 = vadd.f32 %v247_v28, %v231_v32 }
  0x90   :  { %v258_v41 = vadd.f32 %v247_v28, %v232_v33  ;;  %v259_v42 = vadd.f32 %v247_v28, %v233_v34  ;;  %v260_v43 = vadd.f32 %v247_v28, %v234_v35  ;;  %v261_v44 = vadd.f32 %v247_v28, %v235_v36  ;;  %v289_v2 = vpop.permute.xlu0 %288 }
  0x91   :  { %v270_v45 = vmax.f32 %v254_v37, 0.0  ;;  %v271_v46 = vmax.f32 %v255_v38, 0.0  ;;  %v272_v47 = vmax.f32 %v256_v39, 0.0  ;;  %v273_v48 = vmax.f32 %v257_v40, 0.0 }
  0x92   :  { %v274_v49 = vmax.f32 %v258_v41, 0.0  ;;  %v275_v50 = vmax.f32 %v259_v42, 0.0  ;;  %v276_v51 = vmax.f32 %v260_v43, 0.0  ;;  %v277_v52 = vmax.f32 %v261_v44, 0.0 }
  0x93   :  { %v236_v54 = vadd.f32 %v220_v10, %v124_v20  ;;  %v237_v55 = vadd.f32 %v221_v12, %v125_v21  ;;  %v238_v56 = vadd.f32 %v222_v13, %v126_v22  ;;  %v239_v57 = vadd.f32 %v223_v14, %v127_v23  ;;  %v294_v12 = vpop.permute.xlu1 %293 }
  0x94   :  { %v240_v58 = vadd.f32 %v224_v15, %v128_v24  ;;  %v241_v59 = vadd.f32 %v225_v16, %v129_v25  ;;  %v242_v60 = vadd.f32 %v226_v17, %v130_v26  ;;  %v243_v61 = vadd.f32 %v227_v19, %v131_v27 }
  0x95   :  { %v262_v62 = vadd.f32 %v252_v53, %v236_v54  ;;  %v263_v63 = vadd.f32 %v252_v53, %v237_v55  ;;  %v264_v0 = vadd.f32 %v252_v53, %v238_v56  ;;  %v265_v1 = vadd.f32 %v252_v53, %v239_v57 }
  0x96   :  { %v266_v3 = vadd.f32 %v252_v53, %v240_v58  ;;  %v267_v4 = vadd.f32 %v252_v53, %v241_v59  ;;  %v268_v5 = vadd.f32 %v252_v53, %v242_v60  ;;  %v269_v6 = vadd.f32 %v252_v53, %v243_v61 }
  0x97   :  { %v278_v7 = vmax.f32 %v262_v62, 0.0  ;;  %v279_v8 = vmax.f32 %v263_v63, 0.0  ;;  %v280_v9 = vmax.f32 %v264_v0, 0.0  ;;  %v281_v10 = vmax.f32 %v265_v1, 0.0 }
  0x98   :  { %v282_v13 = vmax.f32 %v266_v3, 0.0  ;;  %v283_v14 = vmax.f32 %v267_v4, 0.0  ;;  %v284_v15 = vmax.f32 %v268_v5, 0.0  ;;  %v285_v16 = vmax.f32 %v269_v6, 0.0 }
  0x99   :  { %v296_v17 = vmul.f32 %v289_v2, %v270_v45  ;;  %v297_v19 = vmul.f32 %v289_v2, %v271_v46  ;;  %v298_v20 = vmul.f32 %v289_v2, %v272_v47  ;;  %v299_v21 = vmul.f32 %v289_v2, %v273_v48 }
  0x9a   :  { %v300_v22 = vmul.f32 %v289_v2, %v274_v49  ;;  %v301_v23 = vmul.f32 %v289_v2, %v275_v50  ;;  %v302_v24 = vmul.f32 %v289_v2, %v276_v51  ;;  %v303_v25 = vmul.f32 %v289_v2, %v277_v52 }
  0x9b   :  { %v304_v26 = vmul.f32 %v294_v12, %v278_v7  ;;  %v305_v27 = vmul.f32 %v294_v12, %v279_v8  ;;  %v306_v28 = vmul.f32 %v294_v12, %v280_v9  ;;  %v307_v29 = vmul.f32 %v294_v12, %v281_v10 }
  0x9c   :  { %v308_v30 = vmul.f32 %v294_v12, %v282_v13  ;;  %v309_v31 = vmul.f32 %v294_v12, %v283_v14  ;;  %v310_v32 = vmul.f32 %v294_v12, %v284_v15  ;;  %v311_v33 = vmul.f32 %v294_v12, %v285_v16 }
  0x9d   :  { %v312_v34 = vadd.f32 %v304_v26, %v296_v17  ;;  %v319_v35 = vadd.f32 %v305_v27, %v297_v19  ;;  %v326_v36 = vadd.f32 %v306_v28, %v298_v20  ;;  %v333_v37 = vadd.f32 %v307_v29, %v299_v21  ;;  %v371_v20 = vpop.permute.xlu0 %370 }
  0x9e   :  { %v340_v38 = vadd.f32 %v308_v30, %v300_v22  ;;  %v347_v39 = vadd.f32 %v309_v31, %v301_v23  ;;  %v354_v40 = vadd.f32 %v310_v32, %v302_v24  ;;  %v361_v41 = vadd.f32 %v311_v33, %v303_v25 }
  0x9f   :  { %v313_v42 = vrot.slane %v312_v34, 4  ;;  %v320_v43 = vrot.slane %v319_v35, 4  ;;  %v327_v44 = vrot.slane %v326_v36, 4  ;;  %v334_v45 = vrot.slane %v333_v37, 4 }
  0xa0   :  { %v341_v46 = vrot.slane %v340_v38, 4  ;;  %v348_v47 = vrot.slane %v347_v39, 4  ;;  %v355_v48 = vrot.slane %v354_v40, 4  ;;  %v362_v49 = vrot.slane %v361_v41, 4 }
  0xa1   :  { %v314_v50 = vadd.f32 %v313_v42, %v312_v34  ;;  %v321_v51 = vadd.f32 %v320_v43, %v319_v35  ;;  %v328_v52 = vadd.f32 %v327_v44, %v326_v36  ;;  %v335_v53 = vadd.f32 %v334_v45, %v333_v37 }
  0xa2   :  { %v342_v54 = vadd.f32 %v341_v46, %v340_v38  ;;  %v349_v55 = vadd.f32 %v348_v47, %v347_v39  ;;  %v356_v56 = vadd.f32 %v355_v48, %v354_v40  ;;  %v363_v57 = vadd.f32 %v362_v49, %v361_v41 }
  0xa3   :  { %v315_v58 = vrot.slane %v314_v50, 2  ;;  %v322_v59 = vrot.slane %v321_v51, 2  ;;  %v329_v60 = vrot.slane %v328_v52, 2  ;;  %v336_v61 = vrot.slane %v335_v53, 2 }
  0xa4   :  { %v343_v62 = vrot.slane %v342_v54, 2  ;;  %v350_v63 = vrot.slane %v349_v55, 2  ;;  %v357_v0 = vrot.slane %v356_v56, 2  ;;  %v364_v1 = vrot.slane %v363_v57, 2 }
  0xa5   :  { %v316_v2 = vadd.f32 %v315_v58, %v314_v50  ;;  %v323_v3 = vadd.f32 %v322_v59, %v321_v51  ;;  %v330_v4 = vadd.f32 %v329_v60, %v328_v52  ;;  %v337_v5 = vadd.f32 %v336_v61, %v335_v53 }
  0xa6   :  { %v344_v6 = vadd.f32 %v343_v62, %v342_v54  ;;  %v351_v7 = vadd.f32 %v350_v63, %v349_v55  ;;  %v358_v8 = vadd.f32 %v357_v0, %v356_v56  ;;  %v365_v9 = vadd.f32 %v364_v1, %v363_v57 }
  0xa7   :  { %v317_v10 = vrot.slane %v316_v2, 1  ;;  %v324_v12 = vrot.slane %v323_v3, 1  ;;  %v331_v13 = vrot.slane %v330_v4, 1  ;;  %v338_v14 = vrot.slane %v337_v5, 1 }
  0xa8   :  { %v345_v15 = vrot.slane %v344_v6, 1  ;;  %v352_v16 = vrot.slane %v351_v7, 1  ;;  %v359_v17 = vrot.slane %v358_v8, 1  ;;  %v366_v19 = vrot.slane %v365_v9, 1 }
  0xa9   :  { %v318_v21 = vadd.f32 %v317_v10, %v316_v2  ;;  %v325_v22 = vadd.f32 %v324_v12, %v323_v3  ;;  %v332_v23 = vadd.f32 %v331_v13, %v330_v4  ;;  %v339_v24 = vadd.f32 %v338_v14, %v337_v5 }
  0xaa   :  { %v346_v25 = vadd.f32 %v345_v15, %v344_v6  ;;  %v353_v26 = vadd.f32 %v352_v16, %v351_v7  ;;  %v360_v27 = vadd.f32 %v359_v17, %v358_v8  ;;  %v376_v28 = vrot.slane %v371_v20, %v645_v18 }
  0xab   :  { %v367_v29 = vadd.f32 %v366_v19, %v365_v9  ;;  %v579_v56 = vmov 1966171168  }
  0xac   :  { %v377_v30 = vadd.f32 %v376_v28, %v318_v21  ;;  %v378_v31 = vadd.f32 %v376_v28, %v325_v22  ;;  %v379_v32 = vadd.f32 %v376_v28, %v332_v23  ;;  %v380_v33 = vadd.f32 %v376_v28, %v339_v24 }
  0xad   :  { %v381_v34 = vadd.f32 %v376_v28, %v346_v25  ;;  %v382_v35 = vadd.f32 %v376_v28, %v353_v26  ;;  %v383_v36 = vadd.f32 %v376_v28, %v360_v27  ;;  %v384_v40 = vadd.f32 %v376_v28, %v367_v29 }
  0xae   :  { %v506_v37 = vmul.f32 -1.442695, %v377_v30  ;;  %v507_v38 = vmul.f32 -1.442695, %v378_v31  ;;  %v508_v39 = vmul.f32 -1.442695, %v379_v32  ;;  %v446_v57 = vunpack.c.l.s4 %v579_v56 }
  0xaf   :  { %v509_v41 = vmul.f32 -1.442695, %v380_v33  ;;  %v510_v42 = vmul.f32 -1.442695, %v381_v34  ;;  %v511_v43 = vmul.f32 -1.442695, %v382_v35 }
  0xb0   :  { %521 = vpow2.f32 %v506_v37  ;;  %v512_v44 = vmul.f32 -1.442695, %v383_v36  ;;  %v513_v18 = vmul.f32 -1.442695, %v384_v40  ;;  %v447_v63 = vunpack.c.0.s8 %v446_v57 }
  0xb1   :  { %523 = vpow2.f32 %v507_v38 }
  0xb2   :  { %525 = vpow2.f32 %v508_v39  ;;  %v450_v1 = vsub.s32 %v447_v63, %v632_v11 }
  0xb3   :  { %527 = vpow2.f32 %v509_v41 }
  0xb4   :  { %529 = vpow2.f32 %v510_v42 }
  0xb5   :  { %531 = vpow2.f32 %v511_v43 }
  0xb6   :  { %533 = vpow2.f32 %v512_v44 }
  0xb7   :  { %535 = vpow2.f32 %v513_v18 }
  0xba   :  { %v522_v45 = vpop.eup %521 }
  0xbb   :  { %v524_v46 = vpop.eup %523  ;;  %v409_v47 = vadd.f32 1.0, %v522_v45 }
  0xbc   :  { %v526_v48 = vpop.eup %525  ;;  %v410_v49 = vadd.f32 1.0, %v524_v46 }
  0xbd   :  { %v528_v50 = vpop.eup %527  ;;  %v411_v51 = vadd.f32 1.0, %v526_v48  ;;  %537 = vrcp.f32 %v409_v47 }
  0xbe   :  { %v530_v52 = vpop.eup %529  ;;  %v412_v53 = vadd.f32 1.0, %v528_v50  ;;  %539 = vrcp.f32 %v410_v49 }
  0xbf   :  { %v532_v54 = vpop.eup %531  ;;  %v413_v55 = vadd.f32 1.0, %v530_v52  ;;  %541 = vrcp.f32 %v411_v51 }
  0xc0   :  { %v534_v58 = vpop.eup %533  ;;  %v414_v59 = vadd.f32 1.0, %v532_v54  ;;  %543 = vrcp.f32 %v412_v53 }
  0xc1   :  { %v536_v60 = vpop.eup %535  ;;  %v415_v61 = vadd.f32 1.0, %v534_v58  ;;  %545 = vrcp.f32 %v413_v55 }
  0xc2   :  { %v416_v62 = vadd.f32 1.0, %v536_v60  ;;  %547 = vrcp.f32 %v414_v59 }
  0xc3   :  { %549 = vrcp.f32 %v415_v61 }
  0xc4   :  { %551 = vrcp.f32 %v416_v62 }
  0xc7   :  { %v538_v0 = vpop.eup %537 }
  0xc8   :  { %v540_v2 = vpop.eup %539 }
  0xc9   :  { %v542_v3 = vpop.eup %541  ;;  %v441_v4 = vcombine.low %v538_v0, %v540_v2 }
  0xca   :  { %v544_v5 = vpop.eup %543 }
  0xcb   :  { %v546_v6 = vpop.eup %545  ;;  %v442_v7 = vcombine.low %v542_v3, %v544_v5  ;;  %v451_v8 = vrot.slane %v441_v4, %v450_v1 }
  0xcc   :  { %v548_v9 = vpop.eup %547 }
  0xcd   :  { %v550_v10 = vpop.eup %549  ;;  %v443_v12 = vcombine.low %v546_v6, %v548_v9  ;;  %v458_v13 = vrot.slane %v442_v7, %v450_v1 }
  0xce   :  { %v552_v14 = vpop.eup %551 }
  0xcf   :  { %v444_v15 = vcombine.low %v550_v10, %v552_v14  ;;  %v465_v16 = vrot.slane %v443_v12, %v450_v1  ;;  %v473_v17 = vcombine.low %v451_v8, %v458_v13 }
  0xd1   :  { %v472_v19 = vrot.slane %v444_v15, %v450_v1  ;;  %v481_v21 = vrot.slane %v473_v17, %v450_v1 }
  0xd3   :  { %v474_v20 = vcombine.low %v465_v16, %v472_v19 }
  0xd5   :  { %v488_v11 = vrot.slane %v474_v20, %v450_v1 }
  0xd7   :  { %v489_v22 = vcombine.low %v481_v21, %v488_v11 }
  0xd9   :  { %491 = vst [vmem:[#allocation3] sm:$0xff] %v489_v22 }
  0xda   :  { %564 = shalt.err (!%p561_p4)
}
  0xdb   :  { %s565_s11 = scalar_lea.hbm %s679_s5, 128 }
  0xdc   :  { %p566_p5 = scmp.ne.s32.totalorder %s679_s5, %s565_s11  ;;  %p569_p6 = scmp.lt.u32.totalorder %s565_s11, %s679_s5 }
  0xde   :  { %p571_p7 = pnand %p569_p6, %p566_p5 }
  0xe0   :  { %574 = shalt.err (!%p571_p7)
}
  0xe1   :  { %501 = dma.vmem_to_hbm [thread:$0]  %s499_s7, 128, %s679_s5, [#allocation4]  }
  0xe2   :  { %575 = dma.done.wait [#allocation4], 128  }
  0xe3   :  { %576 = vsyncadd [#allocation4], 4294967168 }
  0xe4   :  { %505 = vsyncpa [#allocation4], 1 }

</bundles_post_ra>
